<compile_context>
chip_gen: v5e
topology: v5e:2x2
jax: 0.10.0
libtpu: 0.0.40
codegen_flags: <defaults>
</compile_context>

<pallas_src>
import jax
import jax.numpy as jnp
from jax.experimental import pallas as pl
from jax.experimental.pallas import tpu as pltpu

NEG_SLOPE = 0.2   # LeakyReLU(0.2)
LANES = 128       # lane-dense activation width for every layer

# feature lane layout of the (B, 128) input block
#   lanes 0:12  -> bpos
#   lane  12    -> xpos
#   lane  13    -> 1.0  (bias / ones carry lane)
#   lanes 14:   -> 0
_BPOS_L, _XPOS_L, _ONE_L = 0, 12, 13


def _leaky_relu(x):
    return jnp.where(x > 0, x, NEG_SLOPE * x)


def _round_up(n, m):
    return ((n + m - 1) // m) * m


# ---------------------------- Pallas kernel --------------------------------
def qnetwork_kernel(feat_ref, w_ref, q_ref):
    # feat_ref: (B_tile, 128)   w_ref: (3, 128, 128)   q_ref: (B_tile, 128)
    h = _leaky_relu(jnp.dot(feat_ref[...], w_ref[0],
                            preferred_element_type=jnp.float32))
    h = _leaky_relu(jnp.dot(h, w_ref[1],
                            preferred_element_type=jnp.float32))
    q_ref[...] = jnp.dot(h, w_ref[2],
                         preferred_element_type=jnp.float32)


# ---------------------------- param handling --------------------------------
def init_params(key):
    """Deterministic synthetic init (PyTorch-style U(-1/sqrt(fan_in), +))."""
    def linear(k, fan_in, fan_out):
        kw, kb = jax.random.split(k)
        bound = 1.0 / float(fan_in) ** 0.5
        w = jax.random.uniform(kw, (fan_in, fan_out), jnp.float32, -bound, bound)
        b = jax.random.uniform(kb, (1, fan_out), jnp.float32, -bound, bound)
        return w, b

    ks = jax.random.split(key, 6)
    vw1, vb1 = linear(ks[0], 13, 10)
    vw2, vb2 = linear(ks[1], 10, 5)
    vw3, vb3 = linear(ks[2], 5, 1)
    aw1, ab1 = linear(ks[3], 13, 10)
    aw2, ab2 = linear(ks[4], 10, 5)
    aw3, ab3 = linear(ks[5], 5, 3)
    return dict(vw1=vw1, vb1=vb1, vw2=vw2, vb2=vb2, vw3=vw3, vb3=vb3,
                aw1=aw1, ab1=ab1, aw2=aw2, ab2=ab2, aw3=aw3, ab3=ab3)


def pack_params(p):
    """Fuse streams + fold feature / bias / dueling-combine into a (3,128,128)
    weight stack. Runs once per parameter set, outside the hot path.
    All padded rows/cols are exactly zero (required for correctness)."""
    # fused layer 1: [value | advantage]
    w1 = jnp.concatenate([p["vw1"], p["aw1"]], axis=1)          # (13, 20)
    b1 = jnp.concatenate([p["vb1"], p["ab1"]], axis=1)          # (1, 20)
    # fused layer 2: block-diagonal
    w2 = jnp.zeros((20, 10), jnp.float32)
    w2 = w2.at[0:10, 0:5].set(p["vw2"]).at[10:20, 5:10].set(p["aw2"])
    b2 = jnp.concatenate([p["vb2"], p["ab2"]], axis=1)          # (1, 10)
    # fused layer 3: block-diagonal -> [v, a0, a1, a2]
    w3 = jnp.zeros((10, 4), jnp.float32)
    w3 = w3.at[0:5, 0:1].set(p["vw3"]).at[5:10, 1:4].set(p["aw3"])
    b3 = jnp.concatenate([p["vb3"], p["ab3"]], axis=1)          # (1, 4)

    # fold features f = [xpos, bpos - xpos]:
    #   f @ W1 = bpos @ W1[1:] + xpos * (W1[0] - colsum(W1[1:]))
    w1b = w1[1:13, :]                                           # (12, 20)
    w1x = w1[0:1, :] - jnp.sum(w1[1:13, :], axis=0, keepdims=True)

    # fold dueling combine q = v + a - mean(a):  [v,a0,a1,a2] @ C
    C = jnp.array([[1.0, 1.0, 1.0],
                   [2 / 3, -1 / 3, -1 / 3],
                   [-1 / 3, 2 / 3, -1 / 3],
                   [-1 / 3, -1 / 3, 2 / 3]], jnp.float32)       # (4, 3)
    w3q = w3 @ C                                                # (10, 3)
    b3q = b3 @ C                                                # (1, 3)

    wstack = jnp.zeros((3, LANES, LANES), jnp.float32)
    # layer 1: rows = input lanes (bpos | xpos | ones), cols 0:20 = hidden,
    #          col 20 carries the ones lane forward.
    wstack = wstack.at[0, _BPOS_L:_BPOS_L + 12, 0:20].set(w1b)
    wstack = wstack.at[0, _XPOS_L, 0:20].set(w1x[0])
    wstack = wstack.at[0, _ONE_L, 0:20].set(b1[0])
    wstack = wstack.at[0, _ONE_L, 20].set(1.0)
    # layer 2: rows 0:20 = hidden, row 20 = ones lane; cols 0:10 hidden,
    #          col 10 carries the ones lane forward.
    wstack = wstack.at[1, 0:20, 0:10].set(w2)
    wstack = wstack.at[1, 20, 0:10].set(b2[0])
    wstack = wstack.at[1, 20, 10].set(1.0)
    # layer 3: rows 0:10 = hidden, row 10 = ones lane; cols 0:3 = q.
    wstack = wstack.at[2, 0:10, 0:3].set(w3q)
    wstack = wstack.at[2, 10, 0:3].set(b3q[0])
    return wstack


# ------------------------------ forward -------------------------------------
def qnetwork_forward_batched(wstack, xpos, bpos, *, batch_tile=256):
    """Batched forward: xpos (B,), bpos (B, 12) -> q (B, 3)."""
    xpos = jnp.asarray(xpos, jnp.float32).reshape(-1, 1)        # (B, 1)
    bpos = jnp.asarray(bpos, jnp.float32).reshape(-1, 12)       # (B, 12)
    B = bpos.shape[0]

    # lane-dense (B, 128) feature block: [bpos | xpos | 1 | zeros]
    feat = jnp.concatenate(
        [bpos, xpos, jnp.ones((B, 1), jnp.float32),
         jnp.zeros((B, LANES - 14), jnp.float32)], axis=1)

    # batch tiling: multiples of 8 sublanes, up to `batch_tile` rows per step
    bt = min(batch_tile, max(8, _round_up(B, 8)))
    b_pad = _round_up(B, bt)
    if b_pad != B:
        feat = jnp.pad(feat, ((0, b_pad - B), (0, 0)))

    cost = pl.CostEstimate(
        flops=2 * 3 * b_pad * LANES * LANES,
        transcendentals=0,
        bytes_accessed=2 * b_pad * LANES * 4 + 3 * LANES * LANES * 4)

    q_pad = pl.pallas_call(
        qnetwork_kernel,
        out_shape=jax.ShapeDtypeStruct((b_pad, LANES), jnp.float32),
        grid=(b_pad // bt,),
        in_specs=[
            pl.BlockSpec((bt, LANES), lambda b: (b, 0)),          # activations
            pl.BlockSpec((3, LANES, LANES), lambda b: (0, 0, 0)),  # weight stack
        ],
        out_specs=pl.BlockSpec((bt, LANES), lambda b: (b, 0)),     # lane-dense q
        compiler_params=pltpu.CompilerParams(
            dimension_semantics=("parallel",)),
        cost_estimate=cost,
    )(feat, wstack)

    return q_pad[:B, :3]


def qnetwork_forward(wstack, inp, xpos, bpos):
    """Single-sample forward matching the original module signature."""
    del inp  # unused by the original PyTorch forward as well
    xpos_b = jnp.asarray(xpos, jnp.float32).reshape(1)
    bpos_b = jnp.asarray(bpos, jnp.float32).reshape(1, 12)
    # TODO(synk): at batch=1 this stays launch-overhead bound; callers in a
    # rollout loop should use qnetwork_forward_batched over many states.
    return qnetwork_forward_batched(wstack, xpos_b, bpos_b)


def qnetwork_reference(params, xpos, bpos):
    """Pure-JAX reference of the PyTorch forward (original, unfused params)."""
    xpos_f = jnp.asarray(xpos, jnp.float32).reshape(1, 1)
    diff = (jnp.asarray(bpos, jnp.float32)
            - jnp.asarray(xpos, jnp.float32)).reshape(1, 12)
    f = jnp.concatenate([xpos_f, diff], axis=1)

    h = _leaky_relu(f @ params["vw1"] + params["vb1"])
    h = _leaky_relu(h @ params["vw2"] + params["vb2"])
    v = h @ params["vw3"] + params["vb3"]

    g = _leaky_relu(f @ params["aw1"] + params["ab1"])
    g = _leaky_relu(g @ params["aw2"] + params["ab2"])
    a = g @ params["aw3"] + params["ab3"]
    return v + (a - jnp.mean(a))


if __name__ == "__main__":
    key = jax.random.PRNGKey(0)
    kp, kx, kb = jax.random.split(key, 3)

    params = init_params(kp)
    wstack = pack_params(params)        # built once, outside the hot path

    # small batch of states consistent with the module: per-row scalar xpos
    # and 12-element bpos (the module's `input` arg is unused).
    B = 8
    xpos = jax.random.randint(kx, (B,), 0, 10).astype(jnp.float32)
    bpos = jax.random.randint(kb, (B, 12), 0, 10).astype(jnp.float32)

    fwd = jax.jit(qnetwork_forward_batched)
    q = fwd(wstack, xpos, bpos)
    jax.block_until_ready(q)

    q_ref = jax.vmap(lambda x, b: qnetwork_reference(params, x, b)[0])(xpos, bpos)
    assert q.shape == (B, 3), q.shape
    assert jnp.allclose(q, q_ref, atol=1e-4, rtol=1e-4), (q, q_ref)

    # single-sample path matching the original module signature
    inp = jnp.zeros((1,), jnp.float32)
    q1 = qnetwork_forward(wstack, inp, xpos[0], bpos[0])
    jax.block_until_ready(q1)
    q1_ref = qnetwork_reference(params, xpos[0], bpos[0])
    assert q1.shape == (1, 3), q1.shape
    assert jnp.allclose(q1, q1_ref, atol=1e-4, rtol=1e-4), (q1, q1_ref)

    print("KERNEL_OK")
</pallas_src>

<mosaic_0001>
module attributes {stable_mosaic.version = 11 : i64} {
  func.func @qnetwork_kernel(%arg0: i32, %arg1: memref<8x128xf32, #tpu.memory_space<vmem>>, %arg2: memref<3x128x128xf32, #tpu.memory_space<vmem>>, %arg3: memref<8x128xf32, #tpu.memory_space<vmem>>) attributes {dimension_semantics = [#tpu.dimension_semantics<parallel>], iteration_bounds = array<i64: 1>, scalar_prefetch = 0 : i64, scratch_operands = 0 : i64, tpu.core_type = #tpu.core_type<tc>, window_params = [{transform_indices = @transform_0, window_bounds = array<i64: 8, 128>}, {pipeline_mode = #tpu.pipeline_mode<synchronous>, transform_indices = @transform_1, window_bounds = array<i64: 3, 128, 128>}, {transform_indices = @transform_2, window_bounds = array<i64: 8, 128>}]} {
    %c0 = arith.constant 0 : index
    %c0_0 = arith.constant 0 : index
    %0 = vector.load %arg1[%c0, %c0_0] : memref<8x128xf32, #tpu.memory_space<vmem>>, vector<8x128xf32>
    %c0_1 = arith.constant 0 : index
    %c0_2 = arith.constant 0 : index
    %c0_3 = arith.constant 0 : index
    %1 = vector.load %arg2[%c0_1, %c0_2, %c0_3] : memref<3x128x128xf32, #tpu.memory_space<vmem>>, vector<1x128x128xf32>
    %2 = vector.shape_cast %1 : vector<1x128x128xf32> to vector<128x128xf32>
    %cst = arith.constant dense<0.000000e+00> : vector<8x128xf32>
    %3 = tpu.matmul %0, %2, %cst {dimension_numbers = #tpu.dot_dimension_numbers<[1], [0], [0], [1], [0, 0, 1, 1], [], []>} : vector<8x128xf32>, vector<128x128xf32>, vector<8x128xf32> -> vector<8x128xf32>
    %cst_4 = arith.constant 0.000000e+00 : f32
    %4 = vector.broadcast %cst_4 : f32 to vector<8x128xf32>
    %5 = arith.cmpf ogt, %3, %4 : vector<8x128xf32>
    %cst_5 = arith.constant 2.000000e-01 : f32
    %6 = vector.broadcast %cst_5 : f32 to vector<8x128xf32>
    %7 = arith.mulf %6, %3 : vector<8x128xf32>
    %8 = arith.select %5, %3, %7 : vector<8x128xi1>, vector<8x128xf32>
    %c1 = arith.constant 1 : index
    %c0_6 = arith.constant 0 : index
    %c0_7 = arith.constant 0 : index
    %9 = vector.load %arg2[%c1, %c0_6, %c0_7] : memref<3x128x128xf32, #tpu.memory_space<vmem>>, vector<1x128x128xf32>
    %10 = vector.shape_cast %9 : vector<1x128x128xf32> to vector<128x128xf32>
    %cst_8 = arith.constant dense<0.000000e+00> : vector<8x128xf32>
    %11 = tpu.matmul %8, %10, %cst_8 {dimension_numbers = #tpu.dot_dimension_numbers<[1], [0], [0], [1], [0, 0, 1, 1], [], []>} : vector<8x128xf32>, vector<128x128xf32>, vector<8x128xf32> -> vector<8x128xf32>
    %cst_9 = arith.constant 0.000000e+00 : f32
    %12 = vector.broadcast %cst_9 : f32 to vector<8x128xf32>
    %13 = arith.cmpf ogt, %11, %12 : vector<8x128xf32>
    %cst_10 = arith.constant 2.000000e-01 : f32
    %14 = vector.broadcast %cst_10 : f32 to vector<8x128xf32>
    %15 = arith.mulf %14, %11 : vector<8x128xf32>
    %16 = arith.select %13, %11, %15 : vector<8x128xi1>, vector<8x128xf32>
    %c2 = arith.constant 2 : index
    %c0_11 = arith.constant 0 : index
    %c0_12 = arith.constant 0 : index
    %17 = vector.load %arg2[%c2, %c0_11, %c0_12] : memref<3x128x128xf32, #tpu.memory_space<vmem>>, vector<1x128x128xf32>
    %18 = vector.shape_cast %17 : vector<1x128x128xf32> to vector<128x128xf32>
    %cst_13 = arith.constant dense<0.000000e+00> : vector<8x128xf32>
    %19 = tpu.matmul %16, %18, %cst_13 {dimension_numbers = #tpu.dot_dimension_numbers<[1], [0], [0], [1], [0, 0, 1, 1], [], []>} : vector<8x128xf32>, vector<128x128xf32>, vector<8x128xf32> -> vector<8x128xf32>
    %c0_14 = arith.constant 0 : index
    %c0_15 = arith.constant 0 : index
    %20 = vector.load %arg3[%c0_14, %c0_15] : memref<8x128xf32, #tpu.memory_space<vmem>>, vector<8x128xf32>
    tpu.vector_store %arg3[%c0_14, %c0_15], %19 {strides = array<i32>} : memref<8x128xf32, #tpu.memory_space<vmem>>, vector<8x128xf32>,
    return
  }
  func.func @transform_0(%arg0: i32) -> (i32, i32) {
    %c0_i32 = arith.constant 0 : i32
    %c0_i32_0 = arith.constant 0 : i32
    return %arg0, %c0_i32 : i32, i32
  }
  func.func @transform_1(%arg0: i32) -> (i32, i32, i32) {
    %c0_i32 = arith.constant 0 : i32
    %c0_i32_0 = arith.constant 0 : i32
    %c0_i32_1 = arith.constant 0 : i32
    %c0_i32_2 = arith.constant 0 : i32
    return %c0_i32, %c0_i32_0, %c0_i32_1 : i32, i32, i32
  }
  func.func @transform_2(%arg0: i32) -> (i32, i32) {
    %c0_i32 = arith.constant 0 : i32
    %c0_i32_0 = arith.constant 0 : i32
    return %arg0, %c0_i32 : i32, i32
  }
}

</mosaic_0001>

<bundles_post_ra>
// kernel: qnetwork_forward_batched.1
= control target key start
LH: loop header
LB: loop body
LE: loop exit
PB: predicated region body
PF: predicated region fallthrough
CT: control target
= control target key end

     0   :  { %7 = vsyncpa [#allocation3], 0  ;;  %s179_s12 = smov [#allocation2]   ;;  %s180_s14 = smov 128   ;;  %s206_s0 = inlined_call_operand.vmem [shape: f32[8,128], index: 0, kind: input, shape index: {}]   ;;  %s207_s1 = inlined_call_operand.hbm [shape: f32[3,128,128], index: 1, kind: input, shape index: {}]   ;;  %s208_s2 = inlined_call_operand.vmem [shape: f32[8,128], index: 2, kind: output, shape index: {}]  }
   0x1   :  { %s14_s11 = sshll.u32 %s207_s1, 4  ;;  %s16_s13 = sshll.u32 %s179_s12, 4  ;;  %s15_s11 = int_to_ptr.hbm [resolvable:$true] %s14_s11  ;;  %s17_s13 = int_to_ptr.vmem [resolvable:$true] %s16_s13 }
   0x2   :  { %s181_s15 = smov 8  }
   0x3   :  { %22 = dma.hbm_to_vmem [thread:$0]  %s15_s11, 6144, %s17_s13, [#allocation3], %s180_s14, %s180_s14, %s181_s15  }
   0x4   :  { %177 = dma.done.wait [#allocation3], 6144  }
   0x5   :  { %178 = vsyncadd [#allocation3], 4294961152  ;;  %v43_v0 = vld [vmem:[#allocation2 + $0x78] sm:$0xff]  ;;  %v42_v1 = vld [vmem:[#allocation2 + $0x70] sm:$0xff] }
   0x6   :  { %44 = vmatpush.msra.mxu0 %v43_v0  ;;  %v41_v2 = vld [vmem:[#allocation2 + $0x68] sm:$0xff]  ;;  %v40_v3 = vld [vmem:[#allocation2 + $0x60] sm:$0xff]  ;;  %v83_v4 = vld [vmem:[#allocation2 + $0xf8] sm:$0xff] }
   0x7   :  { %v39_v5 = vld [vmem:[#allocation2 + $0x58] sm:$0xff]  ;;  %84 = vmatpush.msra.mxu1 %v83_v4  ;;  %v82_v6 = vld [vmem:[#allocation2 + $0xf0] sm:$0xff]  ;;  %v81_v7 = vld [vmem:[#allocation2 + $0xe8] sm:$0xff] }
   0x8   :  { %45 = vmatpush.msra.mxu0 %v42_v1  ;;  %v38_v8 = vld [vmem:[#allocation2 + $0x50] sm:$0xff]  ;;  %v80_v9 = vld [vmem:[#allocation2 + $0xe0] sm:$0xff]  ;;  %v37_v10 = vld [vmem:[#allocation2 + $0x48] sm:$0xff] }
   0x9   :  { %85 = vmatpush.msra.mxu1 %v82_v6  ;;  %v79_v11 = vld [vmem:[#allocation2 + $0xd8] sm:$0xff]  ;;  %v36_v12 = vld [vmem:[#allocation2 + $0x40] sm:$0xff]  ;;  %v78_v13 = vld [vmem:[#allocation2 + $0xd0] sm:$0xff] }
   0xa   :  { %46 = vmatpush.msra.mxu0 %v41_v2  ;;  %v35_v14 = vld [vmem:[#allocation2 + $0x38] sm:$0xff]  ;;  %v77_v15 = vld [vmem:[#allocation2 + $0xc8] sm:$0xff]  ;;  %v34_v16 = vld [vmem:[#allocation2 + $0x30] sm:$0xff] }
   0xb   :  { %86 = vmatpush.msra.mxu1 %v81_v7  ;;  %v76_v17 = vld [vmem:[#allocation2 + $0xc0] sm:$0xff]  ;;  %v33_v18 = vld [vmem:[#allocation2 + $0x28] sm:$0xff]  ;;  %v75_v19 = vld [vmem:[#allocation2 + $0xb8] sm:$0xff] }
   0xc   :  { %47 = vmatpush.msra.mxu0 %v40_v3  ;;  %v32_v20 = vld [vmem:[#allocation2 + $0x20] sm:$0xff]  ;;  %v74_v21 = vld [vmem:[#allocation2 + $0xb0] sm:$0xff]  ;;  %v31_v22 = vld [vmem:[#allocation2 + $0x18] sm:$0xff] }
   0xd   :  { %87 = vmatpush.msra.mxu1 %v80_v9  ;;  %v73_v23 = vld [vmem:[#allocation2 + $0xa8] sm:$0xff]  ;;  %v30_v24 = vld [vmem:[#allocation2 + $0x10] sm:$0xff]  ;;  %v72_v25 = vld [vmem:[#allocation2 + $0xa0] sm:$0xff] }
   0xe   :  { %48 = vmatpush.msra.mxu0 %v39_v5  ;;  %v29_v26 = vld [vmem:[#allocation2 + $0x8] sm:$0xff]  ;;  %v71_v27 = vld [vmem:[#allocation2 + $0x98] sm:$0xff]  ;;  %v28_v28 = vld [vmem:[#allocation2] sm:$0xff] }
   0xf   :  { %88 = vmatpush.msra.mxu1 %v79_v11  ;;  %v27_v29 = vld [vmem:[%s206_s0] sm:$0xff]  ;;  %v70_v30 = vld [vmem:[#allocation2 + $0x90] sm:$0xff]  ;;  %v69_v31 = vld [vmem:[#allocation2 + $0x88] sm:$0xff] }
  0x10   :  { %49 = vmatpush.msra.mxu0 %v38_v8  ;;  %v68_v32 = vld [vmem:[#allocation2 + $0x80] sm:$0xff]  ;;  %v123_v33 = vld [vmem:[#allocation2 + $0x178] sm:$0xff]  ;;  %v122_v34 = vld [vmem:[#allocation2 + $0x170] sm:$0xff] }
  0x11   :  { %89 = vmatpush.msra.mxu1 %v78_v13  ;;  %124 = vmatpush.msra.mxu2 %v123_v33  ;;  %v121_v35 = vld [vmem:[#allocation2 + $0x168] sm:$0xff]  ;;  %v120_v36 = vld [vmem:[#allocation2 + $0x160] sm:$0xff]  ;;  %v119_v37 = vld [vmem:[#allocation2 + $0x158] sm:$0xff] }
  0x12   :  { %50 = vmatpush.msra.mxu0 %v37_v10  ;;  %v118_v38 = vld [vmem:[#allocation2 + $0x150] sm:$0xff]  ;;  %v117_v39 = vld [vmem:[#allocation2 + $0x148] sm:$0xff]  ;;  %v116_v40 = vld [vmem:[#allocation2 + $0x140] sm:$0xff] }
  0x13   :  { %90 = vmatpush.msra.mxu1 %v77_v15  ;;  %125 = vmatpush.msra.mxu2 %v122_v34  ;;  %v115_v41 = vld [vmem:[#allocation2 + $0x138] sm:$0xff]  ;;  %v114_v42 = vld [vmem:[#allocation2 + $0x130] sm:$0xff]  ;;  %v113_v43 = vld [vmem:[#allocation2 + $0x128] sm:$0xff] }
  0x14   :  { %51 = vmatpush.msra.mxu0 %v36_v12  ;;  %v112_v44 = vld [vmem:[#allocation2 + $0x120] sm:$0xff]  ;;  %v111_v45 = vld [vmem:[#allocation2 + $0x118] sm:$0xff]  ;;  %v110_v46 = vld [vmem:[#allocation2 + $0x110] sm:$0xff] }
  0x15   :  { %91 = vmatpush.msra.mxu1 %v76_v17  ;;  %126 = vmatpush.msra.mxu2 %v121_v35  ;;  %v109_v50 = vld [vmem:[#allocation2 + $0x108] sm:$0xff]  ;;  %v108_v51 = vld [vmem:[#allocation2 + $0x100] sm:$0xff] }
  0x16   :  { %52 = vmatpush.msra.mxu0 %v35_v14 }
  0x17   :  { %92 = vmatpush.msra.mxu1 %v75_v19  ;;  %127 = vmatpush.msra.mxu2 %v120_v36 }
  0x18   :  { %53 = vmatpush.msra.mxu0 %v34_v16 }
  0x19   :  { %93 = vmatpush.msra.mxu1 %v74_v21  ;;  %128 = vmatpush.msra.mxu2 %v119_v37 }
  0x1a   :  { %54 = vmatpush.msra.mxu0 %v33_v18 }
  0x1b   :  { %94 = vmatpush.msra.mxu1 %v73_v23  ;;  %129 = vmatpush.msra.mxu2 %v118_v38 }
  0x1c   :  { %55 = vmatpush.msra.mxu0 %v32_v20 }
  0x1d   :  { %95 = vmatpush.msra.mxu1 %v72_v25  ;;  %130 = vmatpush.msra.mxu2 %v117_v39 }
  0x1e   :  { %56 = vmatpush.msra.mxu0 %v31_v22 }
  0x1f   :  { %96 = vmatpush.msra.mxu1 %v71_v27  ;;  %131 = vmatpush.msra.mxu2 %v116_v40 }
  0x20   :  { %57 = vmatpush.msra.mxu0 %v30_v24 }
  0x21   :  { %97 = vmatpush.msra.mxu1 %v70_v30  ;;  %132 = vmatpush.msra.mxu2 %v115_v41 }
  0x22   :  { %58 = vmatpush.msra.mxu0 %v29_v26 }
  0x23   :  { %98 = vmatpush.msra.mxu1 %v69_v31  ;;  %133 = vmatpush.msra.mxu2 %v114_v42 }
  0x24   :  { %59 = vmatpush.msra.mxu0 %v28_v28 }
  0x25   :  { %60 = vmatmul.f32.vlgmr.msra.gmra.mxu0 %v27_v29  ;;  %99 = vmatpush.msra.mxu1 %v68_v32 }
  0x26   :  { %134 = vmatpush.msra.mxu2 %v113_v43 }
  0x28   :  { %135 = vmatpush.msra.mxu2 %v112_v44 }
  0x2a   :  { %136 = vmatpush.msra.mxu2 %v111_v45 }
  0x2c   :  { %137 = vmatpush.msra.mxu2 %v110_v46 }
  0x2e   :  { %138 = vmatpush.msra.mxu2 %v109_v50 }
  0x30   :  { %139 = vmatpush.msra.mxu2 %v108_v51 }
  0xa2   :  { %v61_v47 = vpop.f32.mrf.mxu0 }
  0xa3   :  { %vm64_vm0 = vcmp.gt.f32.partialorder %v61_v47, 0.0  ;;  %v65_v48 = vmul.f32 0.2, %v61_v47 }
  0xa5   :  { %v66_v49 = vsel %vm64_vm0, %v61_v47, %v65_v48 }
  0xa6   :  { %100 = vmatmul.f32.vlgmr.msra.gmra.mxu1 %v66_v49 }
 0x123   :  { %v101_v52 = vpop.f32.mrf.mxu1 }
 0x124   :  { %vm104_vm1 = vcmp.gt.f32.partialorder %v101_v52, 0.0  ;;  %v105_v53 = vmul.f32 0.2, %v101_v52 }
 0x126   :  { %v106_v54 = vsel %vm104_vm1, %v101_v52, %v105_v53 }
 0x127   :  { %140 = vmatmul.f32.vlgmr.msra.gmra.mxu2 %v106_v54 }
 0x1aa   :  { %v141_v55 = vpop.f32.mrf.mxu2 }
 0x1ab   :  { %144 = vst [vmem:[%s208_s2] sm:$0xff] %v141_v55 }
 0x1ac   :  { %149 = vsyncpa [#allocation3], 1 }

</bundles_post_ra>
